<compile_context>
chip_gen: v6e
topology: v6e:2x2x1
jax: 0.10.0
libtpu: 0.0.40
codegen_flags: <defaults>
</compile_context>

<pallas_src>
import functools

import jax
import jax.numpy as jnp
from jax.experimental import pallas as pl
from jax.experimental.pallas import tpu as pltpu

_LANES = 128
_SUBLANE_PACK = {4: 8, 2: 16, 1: 32}       # dtype itemsize -> sublane packing
_VMEM_BUDGET = 40 << 20                    # conservative: fits v7x's 64 MiB with headroom

_ACTIVATIONS = {
    "relu": lambda v: jnp.maximum(v, 0.0),
    "gelu": jax.nn.gelu,
    "tanh": jnp.tanh,
    "sigmoid": jax.nn.sigmoid,
    "silu": jax.nn.silu,
    "identity": lambda v: v,
}


def _round_up(n, m):
    return ((n + m - 1) // m) * m


def _pick_hidden_block(Hp, target):
    """Largest multiple of _LANES that divides Hp and does not exceed max(target, _LANES)."""
    target = max(int(target), _LANES)
    nblk = max(1, -(-Hp // target))
    while Hp % nblk or (Hp // nblk) % _LANES:
        nblk += 1
    return Hp // nblk


# --------------------------------------------------------------------------- kernels
def _mlp_fused_kernel(x_ref, w1_ref, b1_ref, w2_ref, b2_ref, o_ref, *, act):
    """linear -> activation -> linear, whole hidden dim in one pass (weights resident)."""
    x = x_ref[...]
    if x.dtype != w1_ref.dtype:
        x = x.astype(w1_ref.dtype)               # e.g. feed the MXU in bf16 if weights are bf16
    h = jnp.dot(x, w1_ref[...], preferred_element_type=jnp.float32)
    h = act(h + b1_ref[...].astype(jnp.float32))
    if h.dtype != w2_ref.dtype:
        h = h.astype(w2_ref.dtype)               # only downcasts when bf16 weights were requested
    y = jnp.dot(h, w2_ref[...], preferred_element_type=jnp.float32)
    y = y + b2_ref[...].astype(jnp.float32)
    o_ref[...] = y.astype(o_ref.dtype)


def _mlp_ktiled_kernel(x_ref, w1_ref, b1_ref, w2_ref, b2_ref, o_ref, acc_ref, *, act):
    """Hidden dim tiled along the last ('arbitrary') grid axis; accumulate y in f32 VMEM."""
    k = pl.program_id(1)

    @pl.when(k == 0)
    def _():
        acc_ref[...] = jnp.zeros_like(acc_ref)

    x = x_ref[...]
    if x.dtype != w1_ref.dtype:
        x = x.astype(w1_ref.dtype)
    h = jnp.dot(x, w1_ref[...], preferred_element_type=jnp.float32)
    h = act(h + b1_ref[...].astype(jnp.float32))
    if h.dtype != w2_ref.dtype:
        h = h.astype(w2_ref.dtype)
    acc_ref[...] += jnp.dot(h, w2_ref[...], preferred_element_type=jnp.float32)

    @pl.when(k == pl.num_programs(1) - 1)
    def _():
        o_ref[...] = (acc_ref[...] + b2_ref[...].astype(jnp.float32)).astype(o_ref.dtype)


# --------------------------------------------------------------------------- parameter prep
def prepare_mlp_params(w1, b1, w2, b2, *, lane_multiple=_LANES, compute_dtype=None):
    """Pad (and optionally cast) the parameters ONCE; reuse the result across forward calls.

    w1: (in_features, hidden), w2: (hidden, out_features)  -- transpose of torch weights.
    lane_multiple: 128 works on all chips; use 256 on v6e/v7x to fully feed the 256x256 MXU.
    compute_dtype=jnp.bfloat16 casts the weights so the MXU runs bf16 passes (accumulation
    stays f32); leave None for exact-f32 matmuls (matches the f32 torch reference).
    """
    D_in, H = w1.shape
    H2, D_out = w2.shape
    assert H2 == H, "w2 must be (hidden, out_features); transpose torch weight"
    assert b1.size == H and b2.size == D_out

    b1 = b1.reshape(1, H).astype(jnp.float32)        # biases stay f32 (added post-accumulation)
    b2 = b2.reshape(1, D_out).astype(jnp.float32)
    if compute_dtype is not None:
        w1 = w1.astype(compute_dtype)
        w2 = w2.astype(compute_dtype)

    Hp = _round_up(H, lane_multiple)
    Dp = _round_up(D_out, lane_multiple)
    if Hp != H:
        w1 = jnp.pad(w1, ((0, 0), (0, Hp - H)))
        b1 = jnp.pad(b1, ((0, 0), (0, Hp - H)))
        w2 = jnp.pad(w2, ((0, Hp - H), (0, 0)))
    if Dp != D_out:
        w2 = jnp.pad(w2, ((0, 0), (0, Dp - D_out)))
        b2 = jnp.pad(b2, ((0, 0), (0, Dp - D_out)))

    return {"w1": w1, "b1": b1, "w2": w2, "b2": b2,
            "hidden_features": H, "out_features": D_out}


# --------------------------------------------------------------------------- forward
def mlp_forward(x, params, *, activation="relu", block_m=512, block_h=None):
    """Forward pass of Net: activation(x @ w1 + b1) @ w2 + b2."""
    w1, b1, w2, b2 = params["w1"], params["b1"], params["w2"], params["b2"]
    D_out = params["out_features"]
    act = _ACTIVATIONS[activation]

    orig_shape = x.shape
    if x.ndim != 2:
        x = x.reshape(-1, orig_shape[-1])
    B, D_in = x.shape
    assert w1.shape[0] == D_in, "w1 must be (in_features, hidden); transpose torch weight"
    Hp = w1.shape[1]
    Dp = w2.shape[1]

    xb = jnp.dtype(x.dtype).itemsize
    wb = jnp.dtype(w1.dtype).itemsize
    ob = xb
    pack = _SUBLANE_PACK.get(xb, 8)

    def footprint(tm, bh):
        k_tiled = bh < Hp
        w_bufs = 2 if k_tiled else 1                       # streamed (2x) vs resident Buffered(1)
        weights = w_bufs * ((D_in + Dp) * bh * wb + (bh + Dp) * 4)
        acts = 2 * tm * (D_in * xb + Dp * ob)              # double-buffered x / out tiles
        live = tm * bh * 4 + (tm * Dp * 4 if k_tiled else 0)
        return weights + acts + live

    # --- batch tile: dtype-aware sublane rounding, shrink to the VMEM budget -----------
    tm = max(pack, _round_up(min(block_m, B), pack))
    while tm > pack and (2 * tm * (D_in * xb + Dp * ob) + tm * Dp * 4) > _VMEM_BUDGET // 2:
        tm = max(pack, _round_up(tm // 2, pack))

    # --- hidden block: keep the weights resident if they fit, otherwise k-tile Hp ------
    if block_h is None:
        bh = Hp
        while bh > _LANES and footprint(tm, bh) > _VMEM_BUDGET:
            nbh = _pick_hidden_block(Hp, bh // 2)
            if nbh == bh:
                break
            bh = nbh
    else:
        bh = _pick_hidden_block(Hp, block_h)
    while tm > pack and footprint(tm, bh) > _VMEM_BUDGET:
        tm = max(pack, _round_up(tm // 2, pack))

    Bp = _round_up(B, tm)
    grid_m = Bp // tm
    k_tiles = Hp // bh

    # v7x megacore: ensure the "parallel" batch axis has >= 2 tiles when there is enough
    # work to split (otherwise the second TensorCore idles).
    flops = 2 * B * Hp * (D_in + Dp)
    if grid_m == 1 and flops > (8 << 20) and _round_up(B, pack) >= 2 * pack:
        tm = max(pack, _round_up((B + 1) // 2, pack))
        Bp = _round_up(B, tm)
        grid_m = Bp // tm

    # --- advisory cost + explicit VMEM limit (v5e default scoped limit is only 16 MiB) -
    cost = pl.CostEstimate(
        flops=int(flops),
        transcendentals=0 if activation in ("relu", "identity") else int(B * Hp),
        bytes_accessed=int(x.size * xb + w1.size * wb + w2.size * wb
                           + b1.size * 4 + b2.size * 4 + B * Dp * ob),
    )
    vmem_limit = int(min(max(2 * footprint(tm, bh), 32 << 20), 100 << 20))

    fused = functools.partial(_mlp_fused_kernel, act=act)

    if grid_m == 1 and k_tiles == 1:
        # Degenerate single-tile problem: skip the grid/pipeline entirely (one MXU pass).
        out = pl.pallas_call(
            fused,
            out_shape=jax.ShapeDtypeStruct((B, Dp), x.dtype),
            compiler_params=pltpu.CompilerParams(vmem_limit_bytes=vmem_limit),
            cost_estimate=cost,
        )(x, w1, b1, w2, b2)
    else:
        x_p = jnp.pad(x, ((0, Bp - B), (0, 0))) if Bp != B else x
        if k_tiles == 1:
            # Weights resident in VMEM (single-buffered); batch tiles of x/out stream.
            def resident(shape):
                return pl.BlockSpec(shape, lambda i: (0, 0), pipeline_mode=pl.Buffered(1))

            out = pl.pallas_call(
                fused,
                out_shape=jax.ShapeDtypeStruct((Bp, Dp), x.dtype),
                grid=(grid_m,),
                in_specs=[
                    pl.BlockSpec((tm, D_in), lambda i: (i, 0)),   # x tiles stream
                    resident((D_in, Hp)),
                    resident((1, Hp)),
                    resident((Hp, Dp)),
                    resident((1, Dp)),
                ],
                out_specs=pl.BlockSpec((tm, Dp), lambda i: (i, 0)),
                compiler_params=pltpu.CompilerParams(
                    dimension_semantics=("parallel",),
                    vmem_limit_bytes=vmem_limit),
                cost_estimate=cost,
            )(x_p, w1, b1, w2, b2)
        else:
            # Large hidden dim: reduction grid axis over Hp, f32 accumulator in VMEM.
            out = pl.pallas_call(
                functools.partial(_mlp_ktiled_kernel, act=act),
                out_shape=jax.ShapeDtypeStruct((Bp, Dp), x.dtype),
                grid=(grid_m, k_tiles),
                in_specs=[
                    pl.BlockSpec((tm, D_in), lambda i, k: (i, 0)),
                    pl.BlockSpec((D_in, bh), lambda i, k: (0, k)),
                    pl.BlockSpec((1, bh),    lambda i, k: (0, k)),
                    pl.BlockSpec((bh, Dp),   lambda i, k: (k, 0)),
                    pl.BlockSpec((1, Dp),    lambda i, k: (0, 0)),
                ],
                out_specs=pl.BlockSpec((tm, Dp), lambda i, k: (i, 0)),
                scratch_shapes=[pltpu.VMEM((tm, Dp), jnp.float32)],
                compiler_params=pltpu.CompilerParams(
                    dimension_semantics=("parallel", "arbitrary"),
                    vmem_limit_bytes=vmem_limit),
                cost_estimate=cost,
            )(x_p, w1, b1, w2, b2)

    out = out[:B, :D_out]
    if len(orig_shape) != 2:
        out = out.reshape(*orig_shape[:-1], D_out)
    return out


def _reference(x, w1, b1, w2, b2, activation="relu"):
    h = _ACTIVATIONS[activation](x @ w1 + b1.reshape(1, -1))
    return h @ w2 + b2.reshape(1, -1)


if __name__ == "__main__":
    key = jax.random.PRNGKey(0)

    def make_mlp(k, d_in, hidden, d_out):
        kw1, kb1, kw2, kb2 = jax.random.split(k, 4)
        bound1 = 1.0 / jnp.sqrt(jnp.float32(d_in))
        bound2 = 1.0 / jnp.sqrt(jnp.float32(hidden))
        w1 = jax.random.uniform(kw1, (d_in, hidden), jnp.float32, -bound1, bound1)
        b1 = jax.random.uniform(kb1, (hidden,), jnp.float32, -bound1, bound1)
        w2 = jax.random.uniform(kw2, (hidden, d_out), jnp.float32, -bound2, bound2)
        b2 = jax.random.uniform(kb2, (d_out,), jnp.float32, -bound2, bound2)
        return w1, b1, w2, b2

    k0, k1, k2, k3 = jax.random.split(key, 4)

    # ---- Test 1: the module's demo shapes (degenerate -> gridless fast path) ----------
    batch, input_size, hidden_size, output_size = 8, 32, 64, 16
    x = jax.random.normal(k0, (batch, input_size), jnp.float32)
    w1, b1, w2, b2 = make_mlp(k1, input_size, hidden_size, output_size)
    params = prepare_mlp_params(w1, b1, w2, b2)
    out = jax.block_until_ready(mlp_forward(x, params))
    ref = _reference(x, w1, b1, w2, b2)
    assert out.shape == (batch, output_size)
    assert jnp.allclose(out, ref, atol=1e-5, rtol=1e-5), "demo-shape mismatch"

    # ---- Test 2: batch-tiled path with resident single-buffered weights, grid=(4,) ----
    B2, D2, H2, O2 = 512, 128, 256, 128
    x2 = jax.random.normal(k2, (B2, D2), jnp.float32)
    w1b, b1b, w2b, b2b = make_mlp(k3, D2, H2, O2)
    params2 = prepare_mlp_params(w1b, b1b, w2b, b2b)
    out2 = jax.block_until_ready(mlp_forward(x2, params2, block_m=128))
    ref2 = _reference(x2, w1b, b1b, w2b, b2b)
    assert jnp.allclose(out2, ref2, atol=1e-4, rtol=1e-4), "batch-tiled mismatch"

    # ---- Test 3: hidden-reduction (k-tiled) path, grid=(4, 2) --------------------------
    out3 = jax.block_until_ready(mlp_forward(x2, params2, block_m=128, block_h=128))
    assert jnp.allclose(out3, ref2, atol=1e-4, rtol=1e-4), "k-tiled mismatch"

    # ---- Test 4: bf16 MXU feed + dtype-aware sublane packing (tm multiple of 16) -------
    params_bf16 = prepare_mlp_params(w1b, b1b, w2b, b2b, compute_dtype=jnp.bfloat16)
    x4 = x2[:64].astype(jnp.bfloat16)
    out4 = jax.block_until_ready(mlp_forward(x4, params_bf16, block_m=32))
    ref4 = _reference(x4.astype(jnp.float32), w1b, b1b, w2b, b2b)
    assert out4.dtype == jnp.bfloat16
    assert jnp.allclose(out4.astype(jnp.float32), ref4, atol=0.15, rtol=0.15), "bf16 mismatch"

    print("KERNEL_OK")
</pallas_src>

<mosaic_0001>
module attributes {stable_mosaic.version = 11 : i64} {
  func.func @_mlp_fused_kernel(%arg0: memref<8x32xf32, #tpu.memory_space<vmem>>, %arg1: memref<32x128xf32, #tpu.memory_space<vmem>>, %arg2: memref<1x128xf32, #tpu.memory_space<vmem>>, %arg3: memref<128x128xf32, #tpu.memory_space<vmem>>, %arg4: memref<1x128xf32, #tpu.memory_space<vmem>>, %arg5: memref<8x128xf32, #tpu.memory_space<vmem>>) attributes {dimension_semantics = [], scalar_prefetch = 0 : i64, scratch_operands = 0 : i64, tpu.core_type = #tpu.core_type<tc>} {
    %c0 = arith.constant 0 : index
    %c0_0 = arith.constant 0 : index
    %0 = vector.load %arg0[%c0, %c0_0] : memref<8x32xf32, #tpu.memory_space<vmem>>, vector<8x32xf32>
    %c0_1 = arith.constant 0 : index
    %c0_2 = arith.constant 0 : index
    %1 = vector.load %arg1[%c0_1, %c0_2] : memref<32x128xf32, #tpu.memory_space<vmem>>, vector<32x128xf32>
    %cst = arith.constant dense<0.000000e+00> : vector<8x128xf32>
    %2 = tpu.matmul %0, %1, %cst {dimension_numbers = #tpu.dot_dimension_numbers<[1], [0], [0], [1], [0, 0, 1, 1], [], []>} : vector<8x32xf32>, vector<32x128xf32>, vector<8x128xf32> -> vector<8x128xf32>
    %c0_3 = arith.constant 0 : index
    %c0_4 = arith.constant 0 : index
    %3 = vector.load %arg2[%c0_3, %c0_4] : memref<1x128xf32, #tpu.memory_space<vmem>>, vector<1x128xf32>
    %4 = vector.broadcast %3 : vector<1x128xf32> to vector<8x128xf32>
    %5 = arith.addf %2, %4 : vector<8x128xf32>
    %cst_5 = arith.constant 0.000000e+00 : f32
    %6 = vector.broadcast %cst_5 : f32 to vector<8x128xf32>
    %7 = arith.maximumf %5, %6 : vector<8x128xf32>
    %c0_6 = arith.constant 0 : index
    %c0_7 = arith.constant 0 : index
    %8 = vector.load %arg3[%c0_6, %c0_7] : memref<128x128xf32, #tpu.memory_space<vmem>>, vector<128x128xf32>
    %cst_8 = arith.constant dense<0.000000e+00> : vector<8x128xf32>
    %9 = tpu.matmul %7, %8, %cst_8 {dimension_numbers = #tpu.dot_dimension_numbers<[1], [0], [0], [1], [0, 0, 1, 1], [], []>} : vector<8x128xf32>, vector<128x128xf32>, vector<8x128xf32> -> vector<8x128xf32>
    %c0_9 = arith.constant 0 : index
    %c0_10 = arith.constant 0 : index
    %10 = vector.load %arg4[%c0_9, %c0_10] : memref<1x128xf32, #tpu.memory_space<vmem>>, vector<1x128xf32>
    %11 = vector.broadcast %10 : vector<1x128xf32> to vector<8x128xf32>
    %12 = arith.addf %9, %11 : vector<8x128xf32>
    %c0_11 = arith.constant 0 : index
    %c0_12 = arith.constant 0 : index
    %13 = vector.load %arg5[%c0_11, %c0_12] : memref<8x128xf32, #tpu.memory_space<vmem>>, vector<8x128xf32>
    tpu.vector_store %arg5[%c0_11, %c0_12], %12 {strides = array<i32>} : memref<8x128xf32, #tpu.memory_space<vmem>>, vector<8x128xf32>,
    return
  }
}

</mosaic_0001>

<bundles_post_ra>
// kernel: tpu_custom_call.1
= control target key start
LH: loop header
LB: loop body
LE: loop exit
PB: predicated region body
PF: predicated region fallthrough
CT: control target
= control target key end

     0   :  { %10 = vsyncpa [#allocation3], 0  ;;  %s500_s0 = inlined_call_operand.hbm [shape: f32[8,32], index: 0, kind: input, shape index: {}]   ;;  %s501_s1 = inlined_call_operand.hbm [shape: f32[32,128], index: 1, kind: input, shape index: {}]   ;;  %s502_s2 = inlined_call_operand.vmem [shape: f32[1,128], index: 2, kind: input, shape index: {}]   ;;  %s503_s3 = inlined_call_operand.hbm [shape: f32[128,128], index: 3, kind: input, shape index: {}]   ;;  %s504_s4 = inlined_call_operand.vmem [shape: f32[1,128], index: 4, kind: input, shape index: {}]   ;;  %s505_s5 = inlined_call_operand.hbm [shape: f32[8,128], index: 5, kind: output, shape index: {}]  }
   0x1   :  { %11 = vsyncpa [#allocation6], 0 }
   0x2   :  { %12 = vsyncpa [#allocation4], 0  ;;  %s422_s18 = smov [#allocation5]  }
   0x3   :  { %s28_s19 = sshll.u32 %s422_s18, 4  ;;  %s29_s19 = int_to_ptr.vmem [resolvable:$true] %s28_s19 }
   0x4   :  { %s344_s20 = scalar_lea.vmem %s29_s19, 512  ;;  %p349_p1 = scmp.lt.s32.totalorder %s29_s19, %s29_s19 }
   0x5   :  { %p345_p0 = scmp.ne.s32.totalorder %s29_s19, %s344_s20  ;;  %p350_p2 = scmp.lt.s32.totalorder %s344_s20, %s344_s20 }
   0x7   :  { %p351_p3 = por %p350_p2, %p349_p1 }
   0x9   :  { %p352_p4 = pnand %p351_p3, %p345_p0 }
   0xb   :  { %355 = shalt.err (!%p352_p4)
}
   0xc   :  { %s423_s21 = smov 128   ;;  %s424_s22 = smov 8  }
   0xd   :  { %34 = dma.hbm_to_vmem [thread:$0]  %s501_s1, 512, %s29_s19, [#allocation6], %s423_s21, %s423_s21, %s424_s22  }
   0xe   :  { %s425_s25 = smov [#allocation2]   ;;  %s426_s27 = smov [#allocation7]  }
   0xf   :  { %s19_s26 = sshll.u32 %s425_s25, 4  ;;  %s42_s28 = sshll.u32 %s426_s27, 4  ;;  %s20_s26 = int_to_ptr.vmem [resolvable:$true] %s19_s26  ;;  %s43_s28 = int_to_ptr.vmem [resolvable:$true] %s42_s28 }
  0x10   :  { %s364_s29 = scalar_lea.vmem %s20_s26, 128  ;;  %p369_p6 = scmp.lt.s32.totalorder %s20_s26, %s20_s26 }
  0x11   :  { %p365_p5 = scmp.ne.s32.totalorder %s20_s26, %s364_s29  ;;  %p370_p7 = scmp.lt.s32.totalorder %s364_s29, %s364_s29 }
  0x13   :  { %p371_p8 = por %p370_p7, %p369_p6 }
  0x15   :  { %p372_p9 = pnand %p371_p8, %p365_p5 }
  0x17   :  { %375 = shalt.err (!%p372_p9)
}
  0x18   :  { %22 = dma.hbm_to_vmem [thread:$0]  %s500_s0, 128, %s20_s26, [#allocation3]  }
  0x19   :  { %s384_s7 = scalar_lea.vmem %s43_s28, 2048  ;;  %p389_p11 = scmp.lt.s32.totalorder %s43_s28, %s43_s28 }
  0x1a   :  { %p385_p10 = scmp.ne.s32.totalorder %s43_s28, %s384_s7  ;;  %p390_p12 = scmp.lt.s32.totalorder %s384_s7, %s384_s7 }
  0x1c   :  { %p391_p13 = por %p390_p12, %p389_p11 }
  0x1e   :  { %p392_p0 = pnand %p391_p13, %p385_p10 }
  0x20   :  { %395 = shalt.err (!%p392_p0)
}
  0x21   :  { %48 = dma.hbm_to_vmem [thread:$0]  %s503_s3, 2048, %s43_s28, [#allocation6], %s423_s21, %s423_s21, %s424_s22  }
  0x22   :  { %416 = dma.done.wait [#allocation3], 128  }
  0x23   :  { %417 = vsyncadd [#allocation3], 4294967168 }
  0x24   :  { %418 = dma.done.wait [#allocation6], 2560  }
  0x25   :  { %419 = vsyncadd [#allocation6], 4294964736  ;;  %v427_v0 = vmov 0.0   ;;  %vm428_vm0 = vmmov 0   ;;  %v64_v1 = vld [vmem:[#allocation5 + $0x18] sm:$0xff]  ;;  %v63_v2 = vld [vmem:[#allocation5 + $0x10] sm:$0xff] }
  0x26   :  { %282 = vmatprep.subr.mxu0 %v427_v0  ;;  %290 = vmatprep.mubr.msk.f32.mxu0 %vm428_vm0, %v427_v0  ;;  %v162_v3 = vld [vmem:[#allocation7 + $0x78] sm:$0xff]  ;;  %v62_v4 = vld [vmem:[#allocation5 + $0x8] sm:$0xff]  ;;  %v161_v5 = vld [vmem:[#allocation7 + $0x70] sm:$0xff]  ;;  %vm72_vm1 = vcmask 261120   ;;  %s429_s11 = smov [#allocation8]  }
  0x27   :  { %293 = vmatprep.subr.mxu1 %v427_v0  ;;  %325 = vmatprep.mubr.msk.f32.mxu1 %vm428_vm0, %v427_v0  ;;  %v160_v6 = vld [vmem:[#allocation7 + $0x68] sm:$0xff]  ;;  %v61_v7 = vld [vmem:[#allocation5] sm:$0xff]  ;;  %v60_v8 = vld [vmem:[#allocation2] sm:$0xff]  ;;  %s247_s12 = sshll.u32 %s429_s11, 4  ;;  %s248_s12 = int_to_ptr.vmem [resolvable:$true] %s247_s12 }
  0x28   :  { %283 = vmatpush3.msra.mxu0 %v64_v1  ;;  %294 = vmatpush3.msra.mxu1 %v162_v3  ;;  %v159_v9 = vld [vmem:[#allocation7 + $0x60] sm:$0xff]  ;;  %v158_v10 = vld [vmem:[#allocation7 + $0x58] sm:$0xff]  ;;  %v157_v11 = vld [vmem:[#allocation7 + $0x50] sm:$0xff]  ;;  %s396_s13 = scalar_lea.vmem %s248_s12, 128  ;;  %p401_p2 = scmp.lt.s32.totalorder %s248_s12, %s248_s12 }
  0x29   :  { %284 = vmatprep.subr.mxu0 %v427_v0  ;;  %295 = vmatprep.subr.mxu1 %v427_v0  ;;  %v156_v12 = vld [vmem:[#allocation7 + $0x48] sm:$0xff]  ;;  %v155_v13 = vld [vmem:[#allocation7 + $0x40] sm:$0xff]  ;;  %v154_v14 = vld [vmem:[#allocation7 + $0x38] sm:$0xff]  ;;  %p397_p1 = scmp.ne.s32.totalorder %s248_s12, %s396_s13  ;;  %p402_p3 = scmp.lt.s32.totalorder %s396_s13, %s396_s13 }
  0x2a   :  { %285 = vmatpush3.msra.mxu0 %v63_v2  ;;  %296 = vmatpush3.msra.mxu1 %v161_v5  ;;  %v153_v15 = vld [vmem:[#allocation7 + $0x30] sm:$0xff]  ;;  %v152_v16 = vld [vmem:[#allocation7 + $0x28] sm:$0xff]  ;;  %v151_v17 = vld [vmem:[#allocation7 + $0x20] sm:$0xff] }
  0x2b   :  { %286 = vmatprep.subr.mxu0 %v427_v0  ;;  %297 = vmatprep.subr.mxu1 %v427_v0  ;;  %v150_v18 = vld [vmem:[#allocation7 + $0x18] sm:$0xff]  ;;  %v149_v19 = vld [vmem:[#allocation7 + $0x10] sm:$0xff]  ;;  %v148_v20 = vld [vmem:[#allocation7 + $0x8] sm:$0xff]  ;;  %p403_p4 = por %p402_p3, %p401_p2 }
  0x2c   :  { %287 = vmatpush3.msra.mxu0 %v62_v4  ;;  %298 = vmatpush3.msra.mxu1 %v160_v6  ;;  %v147_v21 = vld [vmem:[#allocation7] sm:$0xff]  ;;  %v257_v22 = vld [vmem:[%s502_s2] ss:$0 sm:$0xff] }
  0x2d   :  { %288 = vmatprep.subr.mxu0 %v427_v0  ;;  %299 = vmatprep.subr.mxu1 %v427_v0  ;;  %v259_v27 = vld [vmem:[%s504_s4] ss:$0 sm:$0xff]  ;;  %p404_p5 = pnand %p403_p4, %p397_p1 }
  0x2e   :  { %289 = vmatpush3.msra.mxu0 %v61_v7  ;;  %300 = vmatpush3.msra.mxu1 %v159_v9 }
  0x2f   :  { %291 = vmatmul.mubr.msk.f32.vlgmr.msra.gmra.mxu0 %vm72_vm1, %v60_v8  ;;  %301 = vmatprep.subr.mxu1 %v427_v0 }
  0x30   :  { %302 = vmatpush3.msra.mxu1 %v158_v10 }
  0x31   :  { %303 = vmatprep.subr.mxu1 %v427_v0 }
  0x32   :  { %304 = vmatpush3.msra.mxu1 %v157_v11 }
  0x33   :  { %305 = vmatprep.subr.mxu1 %v427_v0 }
  0x34   :  { %306 = vmatpush3.msra.mxu1 %v156_v12 }
  0x35   :  { %307 = vmatprep.subr.mxu1 %v427_v0 }
  0x36   :  { %308 = vmatpush3.msra.mxu1 %v155_v13 }
  0x37   :  { %309 = vmatprep.subr.mxu1 %v427_v0 }
  0x38   :  { %310 = vmatpush3.msra.mxu1 %v154_v14 }
  0x39   :  { %311 = vmatprep.subr.mxu1 %v427_v0 }
  0x3a   :  { %312 = vmatpush3.msra.mxu1 %v153_v15 }
  0x3b   :  { %313 = vmatprep.subr.mxu1 %v427_v0 }
  0x3c   :  { %314 = vmatpush3.msra.mxu1 %v152_v16 }
  0x3d   :  { %315 = vmatprep.subr.mxu1 %v427_v0 }
  0x3e   :  { %316 = vmatpush3.msra.mxu1 %v151_v17 }
  0x3f   :  { %317 = vmatprep.subr.mxu1 %v427_v0 }
  0x40   :  { %318 = vmatpush3.msra.mxu1 %v150_v18 }
  0x41   :  { %319 = vmatprep.subr.mxu1 %v427_v0 }
  0x42   :  { %320 = vmatpush3.msra.mxu1 %v149_v19 }
  0x43   :  { %321 = vmatprep.subr.mxu1 %v427_v0 }
  0x44   :  { %322 = vmatpush3.msra.mxu1 %v148_v20 }
  0x45   :  { %323 = vmatprep.subr.mxu1 %v427_v0 }
  0x46   :  { %324 = vmatpush3.msra.mxu1 %v147_v21 }
  0xef   :  { %v142_v23 = vpop.f32.mrf.mxu0 }
  0xf0   :  { %v143_v24 = vadd.f32 %v257_v22, %v142_v23 }
  0xf1   :  { %v292_v25 = vpop.f32.mrf.mxu0 }
  0xf2   :  { %v146_v26 = vmax.f32 %v143_v24, 0.0 }
  0xf4   :  { %326 = vmatmul.mubr.f32.vlgmr.msra.gmra.mxu1 %v146_v26 }
 0x1b4   :  { %v236_v28 = vpop.f32.mrf.mxu1 }
 0x1b5   :  { %v237_v29 = vadd.f32 %v259_v27, %v236_v28 }
 0x1b6   :  { %v327_v30 = vpop.f32.mrf.mxu1 }
 0x1b7   :  { %240 = vst [vmem:[#allocation8] sm:$0xff] %v237_v29 }
 0x1b8   :  { %407 = shalt.err (!%p404_p5)
}
 0x1b9   :  { %250 = dma.vmem_to_hbm [thread:$0]  %s248_s12, 128, %s505_s5, [#allocation4]  }
 0x1ba   :  { %420 = dma.done.wait [#allocation4], 128  }
 0x1bb   :  { %421 = vsyncadd [#allocation4], 4294967168 }
 0x1bc   :  { %254 = vsyncpa [#allocation3], 1 }
 0x1bd   :  { %255 = vsyncpa [#allocation6], 1 }
 0x1be   :  { %256 = vsyncpa [#allocation4], 1 }

</bundles_post_ra>
